<compile_context>
chip_gen: v5e
topology: v5e:2x2
jax: 0.10.0
libtpu: 0.0.40
codegen_flags: <defaults>
</compile_context>

<pallas_src>
import jax
import jax.numpy as jnp
from jax.experimental import pallas as pl
from jax.experimental.pallas import tpu as pltpu


def _spectral_mul_kernel(a_ref, w_ref, o_ref):
    """a_ref: (2, B, I, M) re/im, w_ref: (2, I, O, M) re/im, o_ref: (2, B, O, n_freq)."""
    _, B, I, M = a_ref.shape
    O = w_ref.shape[2]

    a_re = a_ref[0]                             # (B, I, M)
    a_im = a_ref[1]
    w_re = w_ref[0]                             # (I, O, M)
    w_im = w_ref[1]

    acc_re = jnp.zeros((B, O, M), jnp.float32)
    acc_im = jnp.zeros((B, O, M), jnp.float32)
    # Static unroll over input channels (small in FNO); all math is f32 on the
    # VPU with the mode axis dense in the lane dimension.
    for i in range(I):
        ar = a_re[:, i, :][:, None, :]          # (B, 1, M)
        ai = a_im[:, i, :][:, None, :]
        wr = w_re[i][None, :, :]                # (1, O, M)
        wi = w_im[i][None, :, :]
        acc_re = acc_re + (ar * wr - ai * wi)
        acc_im = acc_im + (ar * wi + ai * wr)

    # Zero the whole (lane-dense) frequency axis, then overwrite the first M
    # modes.  Frequencies >= modes1 stay exactly zero, as in the torch module.
    o_ref[...] = jnp.zeros(o_ref.shape, o_ref.dtype)
    o_ref[0, :, :, pl.ds(0, M)] = acc_re
    o_ref[1, :, :, pl.ds(0, M)] = acc_im


def _spectral_mul_pallas(a_ri, w_ri, n_freq):
    """a_ri: (2, B, I, M) f32, w_ri: (2, I, O, M) f32 -> (2, B, O, n_freq) f32."""
    _, B, I, M = a_ri.shape
    O = w_ri.shape[2]

    cost = pl.CostEstimate(
        flops=8 * M * B * I * O,
        transcendentals=0,
        bytes_accessed=4 * (a_ri.size + w_ri.size + 2 * B * O * n_freq),
    )

    return pl.pallas_call(
        _spectral_mul_kernel,
        grid=(1,),                               # whole problem in one step (fits VMEM)
        in_specs=[
            pl.BlockSpec((2, B, I, M), lambda i: (0, 0, 0, 0)),
            pl.BlockSpec((2, I, O, M), lambda i: (0, 0, 0, 0)),
        ],
        out_specs=pl.BlockSpec((2, B, O, n_freq), lambda i: (0, 0, 0, 0)),
        out_shape=jax.ShapeDtypeStruct((2, B, O, n_freq), jnp.float32),
        compiler_params=pltpu.CompilerParams(
            dimension_semantics=("arbitrary",),
            vmem_limit_bytes=64 * 1024 * 1024,
        ),
        cost_estimate=cost,
    )(a_ri, w_ri)


def spectral_conv1d(x, w_re, w_im, modes1):
    """x: (B, C_in, N) f32; w_*: (C_in, C_out, modes1) f32 (mode axis already last).

    Requires C_in == C_out (inherited from the torch module, whose out_ft
    buffer is allocated with in_channels on axis 1).
    """
    B, C_in, N = x.shape
    n_freq = N // 2 + 1

    # Forward transform: rfftn over ALL axes, exactly like torch.fft.rfftn(x).
    x_ft = jnp.fft.rfftn(x)                                          # (B, C_in, n_freq) c64

    a = x_ft[:, :, :modes1]                                          # first modes1 freqs
    a_ri = jnp.stack([jnp.real(a), jnp.imag(a)]).astype(jnp.float32)  # (2, B, I, M)
    w_ri = jnp.stack([w_re, w_im]).astype(jnp.float32)                # (2, I, O, M)

    out_ri = _spectral_mul_pallas(a_ri, w_ri, n_freq)                # (2, B, O, n_freq)
    out_ft = (out_ri[0] + 1j * out_ri[1]).astype(jnp.complex64)

    # Inverse transform over the LAST axis only, like torch.fft.irfftn(out_ft, s=[N]).
    return jnp.fft.irfftn(out_ft, s=[N])                             # (B, C_out, N) f32


if __name__ == "__main__":
    # Module config (in_channels must equal out_channels, see note above).
    in_channels, out_channels, modes1 = 4, 4, 4
    batch, width = 2, 16

    key = jax.random.PRNGKey(0)
    kx, kwr, kwi = jax.random.split(key, 3)

    # Deterministic inputs / parameters.
    x = jax.random.normal(kx, (batch, in_channels, width), dtype=jnp.float32)
    scale = 1.0 / (in_channels * out_channels)
    # torch.rand(..., dtype=cfloat): real & imag uniform in [0, 1), times scale.
    w_re = scale * jax.random.uniform(kwr, (in_channels, out_channels, modes1),
                                      dtype=jnp.float32)
    w_im = scale * jax.random.uniform(kwi, (in_channels, out_channels, modes1),
                                      dtype=jnp.float32)

    y = spectral_conv1d(x, w_re, w_im, modes1)
    y = jax.block_until_ready(y)

    # Pure-JAX reference (same math, complex einsum) for a sanity check.
    x_ft = jnp.fft.rfftn(x)
    w_c = (w_re + 1j * w_im).astype(jnp.complex64)
    out_ft_ref = jnp.zeros((batch, in_channels, width // 2 + 1), dtype=jnp.complex64)
    out_ft_ref = out_ft_ref.at[:, :, :modes1].set(
        jnp.einsum('bix,iox->box', x_ft[:, :, :modes1], w_c,
                   precision=jax.lax.Precision.HIGHEST))
    y_ref = jnp.fft.irfftn(out_ft_ref, s=[width])

    assert y.shape == (batch, out_channels, width)
    assert jnp.allclose(y, y_ref, atol=1e-5, rtol=1e-5)

    print("KERNEL_OK")
</pallas_src>

<mosaic_0001>
module attributes {stable_mosaic.version = 11 : i64} {
  func.func @_spectral_mul_kernel(%arg0: i32, %arg1: memref<2x2x4x4xf32, #tpu.memory_space<vmem>>, %arg2: memref<2x4x4x4xf32, #tpu.memory_space<vmem>>, %arg3: memref<2x2x4x9xf32, #tpu.memory_space<vmem>>) attributes {dimension_semantics = [#tpu.dimension_semantics<arbitrary>], iteration_bounds = array<i64: 1>, scalar_prefetch = 0 : i64, scratch_operands = 0 : i64, tpu.core_type = #tpu.core_type<tc>, window_params = [{pipeline_mode = #tpu.pipeline_mode<synchronous>, transform_indices = @transform_0, window_bounds = array<i64: 2, 2, 4, 4>}, {pipeline_mode = #tpu.pipeline_mode<synchronous>, transform_indices = @transform_1, window_bounds = array<i64: 2, 4, 4, 4>}, {pipeline_mode = #tpu.pipeline_mode<synchronous>, transform_indices = @transform_2, window_bounds = array<i64: 2, 2, 4, 9>}]} {
    %c0 = arith.constant 0 : index
    %c0_0 = arith.constant 0 : index
    %c0_1 = arith.constant 0 : index
    %c0_2 = arith.constant 0 : index
    %0 = vector.load %arg1[%c0, %c0_0, %c0_1, %c0_2] : memref<2x2x4x4xf32, #tpu.memory_space<vmem>>, vector<1x2x4x4xf32>
    %1 = vector.shape_cast %0 : vector<1x2x4x4xf32> to vector<2x4x4xf32>
    %c1 = arith.constant 1 : index
    %c0_3 = arith.constant 0 : index
    %c0_4 = arith.constant 0 : index
    %c0_5 = arith.constant 0 : index
    %2 = vector.load %arg1[%c1, %c0_3, %c0_4, %c0_5] : memref<2x2x4x4xf32, #tpu.memory_space<vmem>>, vector<1x2x4x4xf32>
    %3 = vector.shape_cast %2 : vector<1x2x4x4xf32> to vector<2x4x4xf32>
    %c0_6 = arith.constant 0 : index
    %c0_7 = arith.constant 0 : index
    %c0_8 = arith.constant 0 : index
    %c0_9 = arith.constant 0 : index
    %4 = vector.load %arg2[%c0_6, %c0_7, %c0_8, %c0_9] : memref<2x4x4x4xf32, #tpu.memory_space<vmem>>, vector<1x4x4x4xf32>
    %5 = vector.shape_cast %4 : vector<1x4x4x4xf32> to vector<4x4x4xf32>
    %c1_10 = arith.constant 1 : index
    %c0_11 = arith.constant 0 : index
    %c0_12 = arith.constant 0 : index
    %c0_13 = arith.constant 0 : index
    %6 = vector.load %arg2[%c1_10, %c0_11, %c0_12, %c0_13] : memref<2x4x4x4xf32, #tpu.memory_space<vmem>>, vector<1x4x4x4xf32>
    %7 = vector.shape_cast %6 : vector<1x4x4x4xf32> to vector<4x4x4xf32>
    %cst = arith.constant 0.000000e+00 : f32
    %8 = vector.broadcast %cst : f32 to vector<2x4x4xf32>
    %cst_14 = arith.constant 0.000000e+00 : f32
    %9 = vector.broadcast %cst_14 : f32 to vector<2x4x4xf32>
    %10 = vector.extract_strided_slice %1 {offsets = [0, 0, 0], sizes = [2, 1, 4], strides = [1, 1, 1]} : vector<2x4x4xf32> to vector<2x1x4xf32>
    %11 = vector.shape_cast %10 : vector<2x1x4xf32> to vector<2x4xf32>
    %12 = vector.shape_cast %11 : vector<2x4xf32> to vector<2x1x4xf32>
    %13 = vector.extract_strided_slice %3 {offsets = [0, 0, 0], sizes = [2, 1, 4], strides = [1, 1, 1]} : vector<2x4x4xf32> to vector<2x1x4xf32>
    %14 = vector.shape_cast %13 : vector<2x1x4xf32> to vector<2x4xf32>
    %15 = vector.shape_cast %14 : vector<2x4xf32> to vector<2x1x4xf32>
    %16 = vector.extract_strided_slice %5 {offsets = [0, 0, 0], sizes = [1, 4, 4], strides = [1, 1, 1]} : vector<4x4x4xf32> to vector<1x4x4xf32>
    %17 = vector.shape_cast %16 : vector<1x4x4xf32> to vector<4x4xf32>
    %18 = vector.shape_cast %17 : vector<4x4xf32> to vector<1x4x4xf32>
    %19 = vector.extract_strided_slice %7 {offsets = [0, 0, 0], sizes = [1, 4, 4], strides = [1, 1, 1]} : vector<4x4x4xf32> to vector<1x4x4xf32>
    %20 = vector.shape_cast %19 : vector<1x4x4xf32> to vector<4x4xf32>
    %21 = vector.shape_cast %20 : vector<4x4xf32> to vector<1x4x4xf32>
    %22 = vector.broadcast %12 : vector<2x1x4xf32> to vector<2x4x4xf32>
    %23 = vector.broadcast %18 : vector<1x4x4xf32> to vector<2x4x4xf32>
    %24 = arith.mulf %22, %23 : vector<2x4x4xf32>
    %25 = vector.broadcast %15 : vector<2x1x4xf32> to vector<2x4x4xf32>
    %26 = vector.broadcast %21 : vector<1x4x4xf32> to vector<2x4x4xf32>
    %27 = arith.mulf %25, %26 : vector<2x4x4xf32>
    %28 = arith.subf %24, %27 : vector<2x4x4xf32>
    %29 = arith.addf %8, %28 : vector<2x4x4xf32>
    %30 = vector.broadcast %12 : vector<2x1x4xf32> to vector<2x4x4xf32>
    %31 = vector.broadcast %21 : vector<1x4x4xf32> to vector<2x4x4xf32>
    %32 = arith.mulf %30, %31 : vector<2x4x4xf32>
    %33 = vector.broadcast %15 : vector<2x1x4xf32> to vector<2x4x4xf32>
    %34 = vector.broadcast %18 : vector<1x4x4xf32> to vector<2x4x4xf32>
    %35 = arith.mulf %33, %34 : vector<2x4x4xf32>
    %36 = arith.addf %32, %35 : vector<2x4x4xf32>
    %37 = arith.addf %9, %36 : vector<2x4x4xf32>
    %38 = vector.extract_strided_slice %1 {offsets = [0, 1, 0], sizes = [2, 1, 4], strides = [1, 1, 1]} : vector<2x4x4xf32> to vector<2x1x4xf32>
    %39 = vector.shape_cast %38 : vector<2x1x4xf32> to vector<2x4xf32>
    %40 = vector.shape_cast %39 : vector<2x4xf32> to vector<2x1x4xf32>
    %41 = vector.extract_strided_slice %3 {offsets = [0, 1, 0], sizes = [2, 1, 4], strides = [1, 1, 1]} : vector<2x4x4xf32> to vector<2x1x4xf32>
    %42 = vector.shape_cast %41 : vector<2x1x4xf32> to vector<2x4xf32>
    %43 = vector.shape_cast %42 : vector<2x4xf32> to vector<2x1x4xf32>
    %44 = vector.extract_strided_slice %5 {offsets = [1, 0, 0], sizes = [1, 4, 4], strides = [1, 1, 1]} : vector<4x4x4xf32> to vector<1x4x4xf32>
    %45 = vector.shape_cast %44 : vector<1x4x4xf32> to vector<4x4xf32>
    %46 = vector.shape_cast %45 : vector<4x4xf32> to vector<1x4x4xf32>
    %47 = vector.extract_strided_slice %7 {offsets = [1, 0, 0], sizes = [1, 4, 4], strides = [1, 1, 1]} : vector<4x4x4xf32> to vector<1x4x4xf32>
    %48 = vector.shape_cast %47 : vector<1x4x4xf32> to vector<4x4xf32>
    %49 = vector.shape_cast %48 : vector<4x4xf32> to vector<1x4x4xf32>
    %50 = vector.broadcast %40 : vector<2x1x4xf32> to vector<2x4x4xf32>
    %51 = vector.broadcast %46 : vector<1x4x4xf32> to vector<2x4x4xf32>
    %52 = arith.mulf %50, %51 : vector<2x4x4xf32>
    %53 = vector.broadcast %43 : vector<2x1x4xf32> to vector<2x4x4xf32>
    %54 = vector.broadcast %49 : vector<1x4x4xf32> to vector<2x4x4xf32>
    %55 = arith.mulf %53, %54 : vector<2x4x4xf32>
    %56 = arith.subf %52, %55 : vector<2x4x4xf32>
    %57 = arith.addf %29, %56 : vector<2x4x4xf32>
    %58 = vector.broadcast %40 : vector<2x1x4xf32> to vector<2x4x4xf32>
    %59 = vector.broadcast %49 : vector<1x4x4xf32> to vector<2x4x4xf32>
    %60 = arith.mulf %58, %59 : vector<2x4x4xf32>
    %61 = vector.broadcast %43 : vector<2x1x4xf32> to vector<2x4x4xf32>
    %62 = vector.broadcast %46 : vector<1x4x4xf32> to vector<2x4x4xf32>
    %63 = arith.mulf %61, %62 : vector<2x4x4xf32>
    %64 = arith.addf %60, %63 : vector<2x4x4xf32>
    %65 = arith.addf %37, %64 : vector<2x4x4xf32>
    %66 = vector.extract_strided_slice %1 {offsets = [0, 2, 0], sizes = [2, 1, 4], strides = [1, 1, 1]} : vector<2x4x4xf32> to vector<2x1x4xf32>
    %67 = vector.shape_cast %66 : vector<2x1x4xf32> to vector<2x4xf32>
    %68 = vector.shape_cast %67 : vector<2x4xf32> to vector<2x1x4xf32>
    %69 = vector.extract_strided_slice %3 {offsets = [0, 2, 0], sizes = [2, 1, 4], strides = [1, 1, 1]} : vector<2x4x4xf32> to vector<2x1x4xf32>
    %70 = vector.shape_cast %69 : vector<2x1x4xf32> to vector<2x4xf32>
    %71 = vector.shape_cast %70 : vector<2x4xf32> to vector<2x1x4xf32>
    %72 = vector.extract_strided_slice %5 {offsets = [2, 0, 0], sizes = [1, 4, 4], strides = [1, 1, 1]} : vector<4x4x4xf32> to vector<1x4x4xf32>
    %73 = vector.shape_cast %72 : vector<1x4x4xf32> to vector<4x4xf32>
    %74 = vector.shape_cast %73 : vector<4x4xf32> to vector<1x4x4xf32>
    %75 = vector.extract_strided_slice %7 {offsets = [2, 0, 0], sizes = [1, 4, 4], strides = [1, 1, 1]} : vector<4x4x4xf32> to vector<1x4x4xf32>
    %76 = vector.shape_cast %75 : vector<1x4x4xf32> to vector<4x4xf32>
    %77 = vector.shape_cast %76 : vector<4x4xf32> to vector<1x4x4xf32>
    %78 = vector.broadcast %68 : vector<2x1x4xf32> to vector<2x4x4xf32>
    %79 = vector.broadcast %74 : vector<1x4x4xf32> to vector<2x4x4xf32>
    %80 = arith.mulf %78, %79 : vector<2x4x4xf32>
    %81 = vector.broadcast %71 : vector<2x1x4xf32> to vector<2x4x4xf32>
    %82 = vector.broadcast %77 : vector<1x4x4xf32> to vector<2x4x4xf32>
    %83 = arith.mulf %81, %82 : vector<2x4x4xf32>
    %84 = arith.subf %80, %83 : vector<2x4x4xf32>
    %85 = arith.addf %57, %84 : vector<2x4x4xf32>
    %86 = vector.broadcast %68 : vector<2x1x4xf32> to vector<2x4x4xf32>
    %87 = vector.broadcast %77 : vector<1x4x4xf32> to vector<2x4x4xf32>
    %88 = arith.mulf %86, %87 : vector<2x4x4xf32>
    %89 = vector.broadcast %71 : vector<2x1x4xf32> to vector<2x4x4xf32>
    %90 = vector.broadcast %74 : vector<1x4x4xf32> to vector<2x4x4xf32>
    %91 = arith.mulf %89, %90 : vector<2x4x4xf32>
    %92 = arith.addf %88, %91 : vector<2x4x4xf32>
    %93 = arith.addf %65, %92 : vector<2x4x4xf32>
    %94 = vector.extract_strided_slice %1 {offsets = [0, 3, 0], sizes = [2, 1, 4], strides = [1, 1, 1]} : vector<2x4x4xf32> to vector<2x1x4xf32>
    %95 = vector.shape_cast %94 : vector<2x1x4xf32> to vector<2x4xf32>
    %96 = vector.shape_cast %95 : vector<2x4xf32> to vector<2x1x4xf32>
    %97 = vector.extract_strided_slice %3 {offsets = [0, 3, 0], sizes = [2, 1, 4], strides = [1, 1, 1]} : vector<2x4x4xf32> to vector<2x1x4xf32>
    %98 = vector.shape_cast %97 : vector<2x1x4xf32> to vector<2x4xf32>
    %99 = vector.shape_cast %98 : vector<2x4xf32> to vector<2x1x4xf32>
    %100 = vector.extract_strided_slice %5 {offsets = [3, 0, 0], sizes = [1, 4, 4], strides = [1, 1, 1]} : vector<4x4x4xf32> to vector<1x4x4xf32>
    %101 = vector.shape_cast %100 : vector<1x4x4xf32> to vector<4x4xf32>
    %102 = vector.shape_cast %101 : vector<4x4xf32> to vector<1x4x4xf32>
    %103 = vector.extract_strided_slice %7 {offsets = [3, 0, 0], sizes = [1, 4, 4], strides = [1, 1, 1]} : vector<4x4x4xf32> to vector<1x4x4xf32>
    %104 = vector.shape_cast %103 : vector<1x4x4xf32> to vector<4x4xf32>
    %105 = vector.shape_cast %104 : vector<4x4xf32> to vector<1x4x4xf32>
    %106 = vector.broadcast %96 : vector<2x1x4xf32> to vector<2x4x4xf32>
    %107 = vector.broadcast %102 : vector<1x4x4xf32> to vector<2x4x4xf32>
    %108 = arith.mulf %106, %107 : vector<2x4x4xf32>
    %109 = vector.broadcast %99 : vector<2x1x4xf32> to vector<2x4x4xf32>
    %110 = vector.broadcast %105 : vector<1x4x4xf32> to vector<2x4x4xf32>
    %111 = arith.mulf %109, %110 : vector<2x4x4xf32>
    %112 = arith.subf %108, %111 : vector<2x4x4xf32>
    %113 = arith.addf %85, %112 : vector<2x4x4xf32>
    %114 = vector.broadcast %96 : vector<2x1x4xf32> to vector<2x4x4xf32>
    %115 = vector.broadcast %105 : vector<1x4x4xf32> to vector<2x4x4xf32>
    %116 = arith.mulf %114, %115 : vector<2x4x4xf32>
    %117 = vector.broadcast %99 : vector<2x1x4xf32> to vector<2x4x4xf32>
    %118 = vector.broadcast %102 : vector<1x4x4xf32> to vector<2x4x4xf32>
    %119 = arith.mulf %117, %118 : vector<2x4x4xf32>
    %120 = arith.addf %116, %119 : vector<2x4x4xf32>
    %121 = arith.addf %93, %120 : vector<2x4x4xf32>
    %cst_15 = arith.constant 0.000000e+00 : f32
    %122 = vector.broadcast %cst_15 : f32 to vector<2x2x4x9xf32>
    %c0_16 = arith.constant 0 : index
    %c0_17 = arith.constant 0 : index
    %c0_18 = arith.constant 0 : index
    %c0_19 = arith.constant 0 : index
    %123 = vector.load %arg3[%c0_16, %c0_17, %c0_18, %c0_19] : memref<2x2x4x9xf32, #tpu.memory_space<vmem>>, vector<2x2x4x9xf32>
    tpu.vector_store %arg3[%c0_16, %c0_17, %c0_18, %c0_19], %122 {strides = array<i32>} : memref<2x2x4x9xf32, #tpu.memory_space<vmem>>, vector<2x2x4x9xf32>,
    %c0_20 = arith.constant 0 : index
    %c0_21 = arith.constant 0 : index
    %c0_22 = arith.constant 0 : index
    %c0_23 = arith.constant 0 : index
    %124 = vector.load %arg3[%c0_20, %c0_21, %c0_22, %c0_23] : memref<2x2x4x9xf32, #tpu.memory_space<vmem>>, vector<1x2x4x4xf32>
    %125 = vector.shape_cast %124 : vector<1x2x4x4xf32> to vector<2x4x4xf32>
    %126 = vector.shape_cast %113 : vector<2x4x4xf32> to vector<1x2x4x4xf32>
    tpu.vector_store %arg3[%c0_20, %c0_21, %c0_22, %c0_23], %126 {strides = array<i32>} : memref<2x2x4x9xf32, #tpu.memory_space<vmem>>, vector<1x2x4x4xf32>,
    %c1_24 = arith.constant 1 : index
    %c0_25 = arith.constant 0 : index
    %c0_26 = arith.constant 0 : index
    %c0_27 = arith.constant 0 : index
    %127 = vector.load %arg3[%c1_24, %c0_25, %c0_26, %c0_27] : memref<2x2x4x9xf32, #tpu.memory_space<vmem>>, vector<1x2x4x4xf32>
    %128 = vector.shape_cast %127 : vector<1x2x4x4xf32> to vector<2x4x4xf32>
    %129 = vector.shape_cast %121 : vector<2x4x4xf32> to vector<1x2x4x4xf32>
    tpu.vector_store %arg3[%c1_24, %c0_25, %c0_26, %c0_27], %129 {strides = array<i32>} : memref<2x2x4x9xf32, #tpu.memory_space<vmem>>, vector<1x2x4x4xf32>,
    return
  }
  func.func @transform_0(%arg0: i32) -> (i32, i32, i32, i32) {
    %c0_i32 = arith.constant 0 : i32
    %c0_i32_0 = arith.constant 0 : i32
    %c0_i32_1 = arith.constant 0 : i32
    %c0_i32_2 = arith.constant 0 : i32
    %c0_i32_3 = arith.constant 0 : i32
    return %c0_i32, %c0_i32_0, %c0_i32_1, %c0_i32_2 : i32, i32, i32, i32
  }
  func.func @transform_1(%arg0: i32) -> (i32, i32, i32, i32) {
    %c0_i32 = arith.constant 0 : i32
    %c0_i32_0 = arith.constant 0 : i32
    %c0_i32_1 = arith.constant 0 : i32
    %c0_i32_2 = arith.constant 0 : i32
    %c0_i32_3 = arith.constant 0 : i32
    return %c0_i32, %c0_i32_0, %c0_i32_1, %c0_i32_2 : i32, i32, i32, i32
  }
  func.func @transform_2(%arg0: i32) -> (i32, i32, i32, i32) {
    %c0_i32 = arith.constant 0 : i32
    %c0_i32_0 = arith.constant 0 : i32
    %c0_i32_1 = arith.constant 0 : i32
    %c0_i32_2 = arith.constant 0 : i32
    %c0_i32_3 = arith.constant 0 : i32
    return %c0_i32, %c0_i32_0, %c0_i32_1, %c0_i32_2 : i32, i32, i32, i32
  }
}

</mosaic_0001>

<bundles_post_ra>
// kernel: tpu_custom_call.1
= control target key start
LH: loop header
LB: loop body
LE: loop exit
PB: predicated region body
PF: predicated region fallthrough
CT: control target
= control target key end

     0   :  { %7 = vsyncpa [#allocation3], 0  ;;  %s362_s0 = inlined_call_operand.hbm [shape: f32[2,2,4,4], index: 0, kind: input, shape index: {}]   ;;  %s363_s1 = inlined_call_operand.hbm [shape: f32[2,4,4,4], index: 1, kind: input, shape index: {}]   ;;  %s364_s2 = inlined_call_operand.hbm [shape: f32[2,2,4,9], index: 2, kind: output, shape index: {}]  }
   0x1   :  { %8 = vsyncpa [#allocation6], 0 }
   0x2   :  { %9 = vsyncpa [#allocation4], 0  ;;  %s14_s11 = sshll.u32 %s362_s0, 4  ;;  %s253_s12 = smov [#allocation2]   ;;  %s15_s11 = int_to_ptr.hbm [resolvable:$true] %s14_s11 }
   0x3   :  { %s16_s13 = sshll.u32 %s253_s12, 4  ;;  %s27_s16 = sshll.u32 %s363_s1, 4  ;;  %s17_s13 = int_to_ptr.vmem [resolvable:$true] %s16_s13  ;;  %s28_s16 = int_to_ptr.hbm [resolvable:$true] %s27_s16 }
   0x4   :  { %s254_s17 = smov 64   ;;  %s255_s18 = smov 4  }
   0x5   :  { %22 = dma.hbm_to_vmem [thread:$0]  %s15_s11, 256, %s17_s13, [#allocation3], %s254_s17, %s254_s17, %s255_s18  }
   0x6   :  { %s256_s19 = smov [#allocation5]  }
   0x7   :  { %s29_s20 = sshll.u32 %s256_s19, 4  ;;  %s30_s20 = int_to_ptr.vmem [resolvable:$true] %s29_s20 }
   0x8   :  { %35 = dma.hbm_to_vmem [thread:$0]  %s28_s16, 512, %s30_s20, [#allocation6], %s254_s17, %s254_s17, %s255_s18  }
   0x9   :  { %247 = dma.done.wait [#allocation3], 256  }
   0xa   :  { %248 = vsyncadd [#allocation3], 4294967040 }
   0xb   :  { %249 = dma.done.wait [#allocation6], 512  }
   0xc   :  { %250 = vsyncadd [#allocation6], 4294966784  ;;  %vm138_vm0 = vcmask 68608   ;;  %v257_v0 = vmov 0.0   ;;  %v286_v1 = vld [vmem:[#allocation2] sm:$0xf] }
   0xd   :  { %139 = vst.msk [vmem:[#allocation7] sm:$0xf] %vm138_vm0, %v257_v0  ;;  %v288_v2 = vld [vmem:[#allocation2 + $0x8] sm:$0xf]  ;;  %v290_v3 = vld [vmem:[#allocation5] sm:$0xf] }
   0xe   :  { %140 = vst.msk [vmem:[#allocation7 + $0x4] sm:$0xf] %vm138_vm0, %v257_v0  ;;  %v292_v4 = vld [vmem:[#allocation5 + $0x4] sm:$0xf]  ;;  %v294_v5 = vld [vmem:[#allocation5 + $0x8] sm:$0xf] }
   0xf   :  { %141 = vst.msk [vmem:[#allocation7 + $0x8] sm:$0xf] %vm138_vm0, %v257_v0  ;;  %v296_v6 = vld [vmem:[#allocation5 + $0xc] sm:$0xf]  ;;  %v298_v7 = vld [vmem:[#allocation5 + $0x10] sm:$0xf] }
  0x10   :  { %142 = vst.msk [vmem:[#allocation7 + $0xc] sm:$0xf] %vm138_vm0, %v257_v0  ;;  %v300_v8 = vld [vmem:[#allocation5 + $0x14] sm:$0xf]  ;;  %v302_v9 = vld [vmem:[#allocation5 + $0x18] sm:$0xf] }
  0x11   :  { %v304_v10 = vld [vmem:[#allocation5 + $0x1c] sm:$0xf]  ;;  %v58_v11 = vperm.slane %v286_v1, 0  ;;  %v62_v12 = vperm.slane %v288_v2, 0  ;;  %v78_v13 = vperm.slane %v286_v1, 1  ;;  %v82_v14 = vperm.slane %v288_v2, 1 }
  0x12   :  { %v98_v15 = vperm.slane %v286_v1, 2  ;;  %v102_v16 = vperm.slane %v288_v2, 2  ;;  %v118_v17 = vperm.slane %v286_v1, 3  ;;  %v122_v18 = vperm.slane %v288_v2, 3  ;;  %v314_v19 = vld [vmem:[#allocation2 + $0x4] sm:$0xf] }
  0x13   :  { %vm143_vm1 = vcmask 27648   ;;  %v60_v20 = vmul.f32 %v58_v11, %v290_v3  ;;  %v64_v21 = vmul.f32 %v62_v12, %v298_v7  ;;  %v80_v22 = vmul.f32 %v78_v13, %v292_v4  ;;  %v48_v24 = vld [vmem:[#allocation2 + $0xc] sm:$0xf]  ;;  %s258_s0 = smov [#allocation7]   ;;  %s155_s23 = sshll.u32 %s364_s2, 4  ;;  %s156_s23 = int_to_ptr.hbm [resolvable:$true] %s155_s23 }
  0x14   :  { %v84_v23 = vmul.f32 %v82_v14, %v300_v8  ;;  %v100_v25 = vmul.f32 %v98_v15, %v294_v5  ;;  %v104_v26 = vmul.f32 %v102_v16, %v302_v9  ;;  %v120_v27 = vmul.f32 %v118_v17, %v296_v6  ;;  %s153_s1 = sshll.u32 %s258_s0, 4  ;;  %s154_s1 = int_to_ptr.vmem [resolvable:$true] %s153_s1 }
  0x15   :  { %v124_v28 = vmul.f32 %v122_v18, %v304_v10  ;;  %v66_v29 = vsub.f32 %v60_v20, %v64_v21  ;;  %v59_v31 = vperm.slane %v314_v19, 0  ;;  %v63_v32 = vperm.slane %v48_v24, 0 }
  0x16   :  { %v86_v30 = vsub.f32 %v80_v22, %v84_v23  ;;  %v106_v33 = vsub.f32 %v100_v25, %v104_v26  ;;  %v79_v35 = vperm.slane %v314_v19, 1  ;;  %v83_v36 = vperm.slane %v48_v24, 1 }
  0x17   :  { %v126_v34 = vsub.f32 %v120_v27, %v124_v28  ;;  %v61_v38 = vmul.f32 %v59_v31, %v290_v3  ;;  %v65_v39 = vmul.f32 %v63_v32, %v298_v7  ;;  %v99_v40 = vperm.slane %v314_v19, 2 }
  0x18   :  { %v88_v37 = vadd.f32 %v86_v30, %v66_v29  ;;  %v81_v41 = vmul.f32 %v79_v35, %v292_v4  ;;  %v85_v42 = vmul.f32 %v83_v36, %v300_v8  ;;  %v103_v43 = vperm.slane %v48_v24, 2 }
  0x19   :  { %v119_v44 = vperm.slane %v314_v19, 3  ;;  %v67_v46 = vsub.f32 %v61_v38, %v65_v39  ;;  %v101_v47 = vmul.f32 %v99_v40, %v294_v5  ;;  %v123_v48 = vperm.slane %v48_v24, 3 }
  0x1a   :  { %v108_v45 = vadd.f32 %v106_v33, %v88_v37  ;;  %v87_v49 = vsub.f32 %v81_v41, %v85_v42  ;;  %v105_v50 = vmul.f32 %v103_v43, %v302_v9  ;;  %v70_v52 = vmul.f32 %v58_v11, %v298_v7 }
  0x1b   :  { %v121_v51 = vmul.f32 %v119_v44, %v296_v6  ;;  %v125_v54 = vmul.f32 %v123_v48, %v304_v10  ;;  %v72_v55 = vmul.f32 %v62_v12, %v290_v3  ;;  %v90_v56 = vmul.f32 %v78_v13, %v300_v8 }
  0x1c   :  { %v128_v53 = vadd.f32 %v126_v34, %v108_v45  ;;  %v89_v57 = vadd.f32 %v87_v49, %v67_v46  ;;  %v107_v58 = vsub.f32 %v101_v47, %v105_v50  ;;  %v92_v59 = vmul.f32 %v82_v14, %v292_v4 }
  0x1d   :  { %v110_v60 = vmul.f32 %v98_v15, %v302_v9  ;;  %v127_v61 = vsub.f32 %v121_v51, %v125_v54  ;;  %v74_v62 = vadd.f32 %v72_v55, %v70_v52  ;;  %v112_v63 = vmul.f32 %v102_v16, %v294_v5 }
  0x1e   :  { %144 = vst.msk [vmem:[#allocation7] sm:$0xf] %vm143_vm1, %v128_v53  ;;  %v130_v0 = vmul.f32 %v118_v17, %v304_v10  ;;  %v109_v1 = vadd.f32 %v107_v58, %v89_v57  ;;  %v94_v2 = vadd.f32 %v92_v59, %v90_v56  ;;  %v132_v11 = vmul.f32 %v122_v18, %v296_v6 }
  0x1f   :  { %v71_v12 = vmul.f32 %v59_v31, %v298_v7  ;;  %v114_v13 = vadd.f32 %v112_v63, %v110_v60  ;;  %v73_v19 = vmul.f32 %v63_v32, %v290_v3  ;;  %v91_v14 = vmul.f32 %v79_v35, %v300_v8 }
  0x20   :  { %v93_v15 = vmul.f32 %v83_v36, %v292_v4  ;;  %v129_v20 = vadd.f32 %v127_v61, %v109_v1  ;;  %v96_v21 = vadd.f32 %v94_v2, %v74_v62  ;;  %v134_v22 = vadd.f32 %v132_v11, %v130_v0 }
  0x21   :  { %v111_v16 = vmul.f32 %v99_v40, %v302_v9  ;;  %v75_v23 = vadd.f32 %v73_v19, %v71_v12  ;;  %v113_v24 = vmul.f32 %v103_v43, %v294_v5  ;;  %v131_v18 = vmul.f32 %v119_v44, %v304_v10 }
  0x22   :  { %v95_v17 = vadd.f32 %v93_v15, %v91_v14  ;;  %145 = vst.msk [vmem:[#allocation7 + $0x4] sm:$0xf] %vm143_vm1, %v129_v20  ;;  %v116_v7 = vadd.f32 %v114_v13, %v96_v21  ;;  %v133_v3 = vmul.f32 %v123_v48, %v296_v6 }
  0x23   :  { %v115_v8 = vadd.f32 %v113_v24, %v111_v16 }
  0x24   :  { %v97_v25 = vadd.f32 %v95_v17, %v75_v23  ;;  %v136_v26 = vadd.f32 %v134_v22, %v116_v7  ;;  %v135_v4 = vadd.f32 %v133_v3, %v131_v18 }
  0x26   :  { %v117_v9 = vadd.f32 %v115_v8, %v97_v25  ;;  %147 = vst.msk [vmem:[#allocation7 + $0x8] sm:$0xf] %vm143_vm1, %v136_v26 }
  0x28   :  { %v137_v5 = vadd.f32 %v135_v4, %v117_v9 }
  0x2a   :  { %148 = vst.msk [vmem:[#allocation7 + $0xc] sm:$0xf] %vm143_vm1, %v137_v5 }
  0x2b   :  { %161 = dma.vmem_to_hbm [thread:$0]  %s154_s1, 256, %s156_s23, [#allocation4], %s254_s17, %s254_s17, %s255_s18  }
  0x2c   :  { %251 = dma.done.wait [#allocation4], 256  }
  0x2d   :  { %252 = vsyncadd [#allocation4], 4294967040 }
  0x2e   :  { %166 = vsyncpa [#allocation3], 1 }
  0x2f   :  { %167 = vsyncpa [#allocation6], 1 }
  0x30   :  { %168 = vsyncpa [#allocation4], 1 }

</bundles_post_ra>
